<compile_context>
chip_gen: v7x
topology: tpu7x:2x2x1
jax: 0.10.0
libtpu: 0.0.40
codegen_flags: <defaults>
</compile_context>

<pallas_src>
import functools

import jax
import jax.numpy as jnp
from jax.experimental import pallas as pl
from jax.experimental.pallas import tpu as pltpu


def _mlp_kernel(x_ref, w1_ref, b1_ref, w2_ref, b2_ref, w3_ref, b3_ref, o_ref):
    # Fused hot path: 3 matmuls + ReLU/ReLU/Sigmoid, all inside the kernel.
    # f32 accumulation even when streaming bf16 activations.
    x = x_ref[...].astype(jnp.float32)

    h1 = jnp.dot(x, w1_ref[...], preferred_element_type=jnp.float32) + b1_ref[...]
    h1 = jnp.maximum(h1, 0.0)

    h2 = jnp.dot(h1, w2_ref[...], preferred_element_type=jnp.float32) + b2_ref[...]
    h2 = jnp.maximum(h2, 0.0)

    z = jnp.dot(h2, w3_ref[...], preferred_element_type=jnp.float32) + b3_ref[...]
    # Exact sigmoid kept so the 1e-5 check vs the f32 reference holds.
    o_ref[...] = jax.nn.sigmoid(z).astype(o_ref.dtype)


def _round_up(v, m):
    return -(-v // m) * m


def _choose_bm(M, Dp, itemsize, block_m):
    """Rows per grid step.

    * Big workloads (M >= 8192 packed rows): >= 8 steps (>= 4 per TensorCore on
      v7x) so per-core prefetch/writeback overlap is real.
    * Medium workloads (M >= 2048): >= 4 steps (>= 2 per TC on v7x).
    * Small workloads: single step — no forced split / per-step overhead on the
      single-TC chips (v5e/v6e).
    * Per-tile x bytes capped at 4 MiB so double-buffered I/O + f32 intermediates
      stay well inside v7x's 64 MiB physical VMEM.
    """
    bm = min(block_m, M)
    if bm < M:
        bm = max(8, (bm // 8) * 8)
    if M >= 8192:
        bm = min(bm, _round_up(-(-M // 8), 8))
    elif M >= 2048:
        bm = min(bm, _round_up(-(-M // 4), 8))
    rows_cap = max(8, ((4 << 20) // (Dp * itemsize)) // 8 * 8)
    if bm > rows_cap:
        bm = rows_cap
    return bm


def pack_params(params):
    """One-time packing, hoisted out of the per-call (jitted) path.

    * Pads the feature dim D to D_eff (a divisor of 128, or a multiple of 128 for
      D > 128) so kernel loads/stores are lane-dense.
    * Folds pack = 128 // D_eff samples per packed row: weights become
      block-diagonal kron(eye(pack), W), biases are tiled.
    Raw (unpacked) weights are kept for the tiny tail path when B % pack != 0.
    """
    w1, b1 = params["w1"], params["b1"]
    w2, b2 = params["w2"], params["b2"]
    w3, b3 = params["w3"], params["b3"]
    D = w1.shape[0]

    if D <= 128:
        D_eff = int(pl.next_power_of_2(D))   # divides 128
        pack = 128 // D_eff
    else:
        D_eff = _round_up(D, 128)
        pack = 1

    if D_eff != D:
        w1 = jnp.pad(w1, ((0, D_eff - D), (0, 0)))
        w3 = jnp.pad(w3, ((0, 0), (0, D_eff - D)))
        b3 = jnp.pad(b3, ((0, 0), (0, D_eff - D)))

    if pack > 1:
        eye = jnp.eye(pack, dtype=w1.dtype)
        w1p, w2p, w3p = (jnp.kron(eye, w) for w in (w1, w2, w3))
        b1p, b2p, b3p = (jnp.tile(b, (1, pack)) for b in (b1, b2, b3))
    else:
        w1p, b1p, w2p, b2p, w3p, b3p = w1, b1, w2, b2, w3, b3

    return {
        "w1p": w1p, "b1p": b1p, "w2p": w2p, "b2p": b2p, "w3p": w3p, "b3p": b3p,
        "w1": params["w1"], "b1": params["b1"],
        "w2": params["w2"], "b2": params["b2"],
        "w3": params["w3"], "b3": params["b3"],
    }


@functools.partial(jax.jit, static_argnames=("block_m", "io_dtype"))
def impact_factor_forward(x, packed, *, block_m=4096, io_dtype=jnp.float32):
    """x: (B, input_dim) float32.  packed: output of pack_params()."""
    B, D = x.shape
    w1p, b1p = packed["w1p"], packed["b1p"]
    w2p, b2p = packed["w2p"], packed["b2p"]
    w3p, b3p = packed["w3p"], packed["b3p"]

    pack = w2p.shape[0] // packed["w2"].shape[0]
    D_eff = w1p.shape[0] // pack
    Dp = pack * D_eff                      # packed lane width (128 when pack > 1)
    H1p, H2p = b1p.shape[1], b2p.shape[1]

    B_main = (B // pack) * pack

    def run_packed(x_main):
        nrows = x_main.shape[0]
        if D_eff != D:
            x_main = jnp.pad(x_main, ((0, 0), (0, D_eff - D)))
        M = nrows // pack
        # Row-major (nrows, D_eff) is bit-identical to (nrows/pack, pack*D_eff).
        x_in = x_main.reshape(M, Dp)
        if x_in.dtype != io_dtype:
            x_in = x_in.astype(io_dtype)   # optional bf16 streaming; f32 accum in-kernel
        itemsize = x_in.dtype.itemsize

        bm = _choose_bm(M, Dp, itemsize, block_m)
        grid = (pl.cdiv(M, bm),)

        weight_bytes = sum(a.size * a.dtype.itemsize
                           for a in (w1p, b1p, w2p, b2p, w3p, b3p))
        cost = pl.CostEstimate(
            flops=2 * M * (Dp * H1p + H1p * H2p + H2p * Dp),
            transcendentals=M * Dp,
            bytes_accessed=2 * M * Dp * itemsize + weight_bytes,
        )

        out = pl.pallas_call(
            _mlp_kernel,
            out_shape=jax.ShapeDtypeStruct((M, Dp), io_dtype),
            grid_spec=pltpu.PrefetchScalarGridSpec(
                num_scalar_prefetch=0,
                grid=grid,
                in_specs=[
                    pl.BlockSpec((bm, Dp), lambda i: (i, 0)),    # x tile over batch
                    pl.BlockSpec(w1p.shape, lambda i: (0, 0)),   # weights resident
                    pl.BlockSpec(b1p.shape, lambda i: (0, 0)),
                    pl.BlockSpec(w2p.shape, lambda i: (0, 0)),
                    pl.BlockSpec(b2p.shape, lambda i: (0, 0)),
                    pl.BlockSpec(w3p.shape, lambda i: (0, 0)),
                    pl.BlockSpec(b3p.shape, lambda i: (0, 0)),
                ],
                out_specs=pl.BlockSpec((bm, Dp), lambda i: (i, 0)),
            ),
            compiler_params=pltpu.CompilerParams(
                dimension_semantics=("parallel",),
                # Explicit headroom: v5e's scoped default is only 16 MiB.
                vmem_limit_bytes=64 << 20,
            ),
            cost_estimate=cost,
        )(x_in, w1p, b1p, w2p, b2p, w3p, b3p)

        out = out.reshape(nrows, D_eff)
        if D_eff != D:
            out = out[:, :D]
        return out

    def run_tail(x_tail):
        # <= pack-1 rows: negligible work; avoids padding/slicing the full array.
        h1 = jax.nn.relu(x_tail @ packed["w1"] + packed["b1"])
        h2 = jax.nn.relu(h1 @ packed["w2"] + packed["b2"])
        return jax.nn.sigmoid(h2 @ packed["w3"] + packed["b3"]).astype(io_dtype)

    if B_main == 0:
        return run_tail(x)
    if B_main == B:
        return run_packed(x)
    return jnp.concatenate([run_packed(x[:B_main]), run_tail(x[B_main:])], axis=0)


def init_params(key, input_dim):
    """Deterministic init mimicking torch.nn.Linear's U(-1/sqrt(fan_in), +1/sqrt(fan_in)).

    Weights are stored as (in, out) = transpose of PyTorch's (out, in) layout,
    so the kernel can do x @ W directly.
    """
    dims = [(input_dim, 64), (64, 32), (32, input_dim)]
    params = {}
    for idx, (fan_in, fan_out) in enumerate(dims, start=1):
        key, kw, kb = jax.random.split(key, 3)
        bound = 1.0 / jnp.sqrt(jnp.float32(fan_in))
        params[f"w{idx}"] = jax.random.uniform(
            kw, (fan_in, fan_out), jnp.float32, minval=-bound, maxval=bound
        )
        params[f"b{idx}"] = jax.random.uniform(
            kb, (1, fan_out), jnp.float32, minval=-bound, maxval=bound
        )
    return params


def reference_forward(x, params):
    """Pure-JAX reference of the PyTorch forward pass."""
    h1 = jax.nn.relu(x @ params["w1"] + params["b1"])
    h2 = jax.nn.relu(h1 @ params["w2"] + params["b2"])
    return jax.nn.sigmoid(h2 @ params["w3"] + params["b3"])


if __name__ == "__main__":
    key = jax.random.PRNGKey(0)
    key, kx, kx2 = jax.random.split(key, 3)

    batch = 8
    input_dim = 32   # small, consistent with Linear(input_dim, 64) -> ... -> input_dim

    params = init_params(key, input_dim)
    packed = pack_params(params)   # one-time packing, outside the per-call path

    x = jax.random.normal(kx, (batch, input_dim), jnp.float32)
    out = jax.block_until_ready(impact_factor_forward(x, packed))
    ref = reference_forward(x, params)
    assert out.shape == (batch, input_dim)
    assert jnp.allclose(out, ref, atol=1e-5, rtol=1e-5), "mismatch vs reference"

    # Misaligned batch exercises the no-padding prefix + tiny tail path.
    x_odd = jax.random.normal(kx2, (batch + 3, input_dim), jnp.float32)
    out_odd = jax.block_until_ready(impact_factor_forward(x_odd, packed))
    ref_odd = reference_forward(x_odd, params)
    assert out_odd.shape == (batch + 3, input_dim)
    assert jnp.allclose(out_odd, ref_odd, atol=1e-5, rtol=1e-5), "mismatch (tail path)"

    print("KERNEL_OK")
</pallas_src>

<mosaic_0001>
module attributes {stable_mosaic.version = 11 : i64} {
  func.func @_mlp_kernel(%arg0: i32, %arg1: memref<2x128xf32, #tpu.memory_space<vmem>>, %arg2: memref<128x256xf32, #tpu.memory_space<vmem>>, %arg3: memref<1x256xf32, #tpu.memory_space<vmem>>, %arg4: memref<256x128xf32, #tpu.memory_space<vmem>>, %arg5: memref<1x128xf32, #tpu.memory_space<vmem>>, %arg6: memref<128x128xf32, #tpu.memory_space<vmem>>, %arg7: memref<1x128xf32, #tpu.memory_space<vmem>>, %arg8: memref<2x128xf32, #tpu.memory_space<vmem>>) attributes {dimension_semantics = [#tpu.dimension_semantics<parallel>], iteration_bounds = array<i64: 1>, scalar_prefetch = 0 : i64, scratch_operands = 0 : i64, tpu.core_type = #tpu.core_type<tc>, window_params = [{transform_indices = @transform_0, window_bounds = array<i64: 2, 128>}, {pipeline_mode = #tpu.pipeline_mode<synchronous>, transform_indices = @transform_1, window_bounds = array<i64: 128, 256>}, {pipeline_mode = #tpu.pipeline_mode<synchronous>, transform_indices = @transform_2, window_bounds = array<i64: 1, 256>}, {pipeline_mode = #tpu.pipeline_mode<synchronous>, transform_indices = @transform_3, window_bounds = array<i64: 256, 128>}, {pipeline_mode = #tpu.pipeline_mode<synchronous>, transform_indices = @transform_4, window_bounds = array<i64: 1, 128>}, {pipeline_mode = #tpu.pipeline_mode<synchronous>, transform_indices = @transform_5, window_bounds = array<i64: 128, 128>}, {pipeline_mode = #tpu.pipeline_mode<synchronous>, transform_indices = @transform_6, window_bounds = array<i64: 1, 128>}, {transform_indices = @transform_7, window_bounds = array<i64: 2, 128>}]} {
    %c0 = arith.constant 0 : index
    %c0_0 = arith.constant 0 : index
    %0 = vector.load %arg1[%c0, %c0_0] : memref<2x128xf32, #tpu.memory_space<vmem>>, vector<2x128xf32>
    %c0_1 = arith.constant 0 : index
    %c0_2 = arith.constant 0 : index
    %1 = vector.load %arg2[%c0_1, %c0_2] : memref<128x256xf32, #tpu.memory_space<vmem>>, vector<128x256xf32>
    %cst = arith.constant dense<0.000000e+00> : vector<2x256xf32>
    %2 = tpu.matmul %0, %1, %cst {dimension_numbers = #tpu.dot_dimension_numbers<[1], [0], [0], [1], [0, 0, 1, 1], [], []>} : vector<2x128xf32>, vector<128x256xf32>, vector<2x256xf32> -> vector<2x256xf32>
    %c0_3 = arith.constant 0 : index
    %c0_4 = arith.constant 0 : index
    %3 = vector.load %arg3[%c0_3, %c0_4] : memref<1x256xf32, #tpu.memory_space<vmem>>, vector<1x256xf32>
    %4 = vector.broadcast %3 : vector<1x256xf32> to vector<2x256xf32>
    %5 = arith.addf %2, %4 : vector<2x256xf32>
    %cst_5 = arith.constant 0.000000e+00 : f32
    %6 = vector.broadcast %cst_5 : f32 to vector<2x256xf32>
    %7 = arith.maximumf %5, %6 : vector<2x256xf32>
    %c0_6 = arith.constant 0 : index
    %c0_7 = arith.constant 0 : index
    %8 = vector.load %arg4[%c0_6, %c0_7] : memref<256x128xf32, #tpu.memory_space<vmem>>, vector<256x128xf32>
    %cst_8 = arith.constant dense<0.000000e+00> : vector<2x128xf32>
    %9 = tpu.matmul %7, %8, %cst_8 {dimension_numbers = #tpu.dot_dimension_numbers<[1], [0], [0], [1], [0, 0, 1, 1], [], []>} : vector<2x256xf32>, vector<256x128xf32>, vector<2x128xf32> -> vector<2x128xf32>
    %c0_9 = arith.constant 0 : index
    %c0_10 = arith.constant 0 : index
    %10 = vector.load %arg5[%c0_9, %c0_10] : memref<1x128xf32, #tpu.memory_space<vmem>>, vector<1x128xf32>
    %11 = vector.broadcast %10 : vector<1x128xf32> to vector<2x128xf32>
    %12 = arith.addf %9, %11 : vector<2x128xf32>
    %cst_11 = arith.constant 0.000000e+00 : f32
    %13 = vector.broadcast %cst_11 : f32 to vector<2x128xf32>
    %14 = arith.maximumf %12, %13 : vector<2x128xf32>
    %c0_12 = arith.constant 0 : index
    %c0_13 = arith.constant 0 : index
    %15 = vector.load %arg6[%c0_12, %c0_13] : memref<128x128xf32, #tpu.memory_space<vmem>>, vector<128x128xf32>
    %cst_14 = arith.constant dense<0.000000e+00> : vector<2x128xf32>
    %16 = tpu.matmul %14, %15, %cst_14 {dimension_numbers = #tpu.dot_dimension_numbers<[1], [0], [0], [1], [0, 0, 1, 1], [], []>} : vector<2x128xf32>, vector<128x128xf32>, vector<2x128xf32> -> vector<2x128xf32>
    %c0_15 = arith.constant 0 : index
    %c0_16 = arith.constant 0 : index
    %17 = vector.load %arg7[%c0_15, %c0_16] : memref<1x128xf32, #tpu.memory_space<vmem>>, vector<1x128xf32>
    %18 = vector.broadcast %17 : vector<1x128xf32> to vector<2x128xf32>
    %19 = arith.addf %16, %18 : vector<2x128xf32>
    %20 = arith.negf %19 : vector<2x128xf32>
    %21 = math.exp %20 : vector<2x128xf32>
    %cst_17 = arith.constant 1.000000e+00 : f32
    %22 = vector.broadcast %cst_17 : f32 to vector<2x128xf32>
    %23 = arith.addf %22, %21 : vector<2x128xf32>
    %24 = arith.divf %22, %23 : vector<2x128xf32>
    %c0_18 = arith.constant 0 : index
    %c0_19 = arith.constant 0 : index
    %25 = vector.load %arg8[%c0_18, %c0_19] : memref<2x128xf32, #tpu.memory_space<vmem>>, vector<2x128xf32>
    tpu.vector_store %arg8[%c0_18, %c0_19], %24 {strides = array<i32>} : memref<2x128xf32, #tpu.memory_space<vmem>>, vector<2x128xf32>,
    return
  }
  func.func @transform_0(%arg0: i32) -> (i32, i32) {
    %c0_i32 = arith.constant 0 : i32
    %c0_i32_0 = arith.constant 0 : i32
    return %arg0, %c0_i32 : i32, i32
  }
  func.func @transform_1(%arg0: i32) -> (i32, i32) {
    %c0_i32 = arith.constant 0 : i32
    %c0_i32_0 = arith.constant 0 : i32
    %c0_i32_1 = arith.constant 0 : i32
    return %c0_i32, %c0_i32_0 : i32, i32
  }
  func.func @transform_2(%arg0: i32) -> (i32, i32) {
    %c0_i32 = arith.constant 0 : i32
    %c0_i32_0 = arith.constant 0 : i32
    %c0_i32_1 = arith.constant 0 : i32
    return %c0_i32, %c0_i32_0 : i32, i32
  }
  func.func @transform_3(%arg0: i32) -> (i32, i32) {
    %c0_i32 = arith.constant 0 : i32
    %c0_i32_0 = arith.constant 0 : i32
    %c0_i32_1 = arith.constant 0 : i32
    return %c0_i32, %c0_i32_0 : i32, i32
  }
  func.func @transform_4(%arg0: i32) -> (i32, i32) {
    %c0_i32 = arith.constant 0 : i32
    %c0_i32_0 = arith.constant 0 : i32
    %c0_i32_1 = arith.constant 0 : i32
    return %c0_i32, %c0_i32_0 : i32, i32
  }
  func.func @transform_5(%arg0: i32) -> (i32, i32) {
    %c0_i32 = arith.constant 0 : i32
    %c0_i32_0 = arith.constant 0 : i32
    %c0_i32_1 = arith.constant 0 : i32
    return %c0_i32, %c0_i32_0 : i32, i32
  }
  func.func @transform_6(%arg0: i32) -> (i32, i32) {
    %c0_i32 = arith.constant 0 : i32
    %c0_i32_0 = arith.constant 0 : i32
    %c0_i32_1 = arith.constant 0 : i32
    return %c0_i32, %c0_i32_0 : i32, i32
  }
  func.func @transform_7(%arg0: i32) -> (i32, i32) {
    %c0_i32 = arith.constant 0 : i32
    %c0_i32_0 = arith.constant 0 : i32
    return %arg0, %c0_i32 : i32, i32
  }
}

</mosaic_0001>

<bundles_post_ra>
// kernel: impact_factor_forward.1
= control target key start
LH: loop header
LB: loop body
LE: loop exit
PB: predicated region body
PF: predicated region fallthrough
CT: control target
= control target key end

     0   :  { %12 = vsyncpa [#allocation3], 0  ;;  %s996_s0 = inlined_call_operand.hbm [shape: f32[2,128], index: 0, kind: input, shape index: {}]   ;;  %s997_s1 = inlined_call_operand.hbm [shape: f32[128,256], index: 1, kind: input, shape index: {}]   ;;  %s998_s2 = inlined_call_operand.hbm [shape: f32[1,256], index: 2, kind: input, shape index: {}]   ;;  %s999_s3 = inlined_call_operand.hbm [shape: f32[256,128], index: 3, kind: input, shape index: {}]   ;;  %s1000_s4 = inlined_call_operand.hbm [shape: f32[1,128], index: 4, kind: input, shape index: {}]   ;;  %s1001_s5 = inlined_call_operand.hbm [shape: f32[128,128], index: 5, kind: input, shape index: {}]   ;;  %s1002_s6 = inlined_call_operand.hbm [shape: f32[1,128], index: 6, kind: input, shape index: {}]   ;;  %s1003_s7 = inlined_call_operand.hbm [shape: f32[2,128], index: 7, kind: output, shape index: {}]  }
   0x1   :  { %13 = vsyncpa [#allocation6], 0 }
   0x2   :  { %14 = vsyncpa [#allocation9], 0 }
   0x3   :  { %15 = vsyncpa [#allocation12], 0 }
   0x4   :  { %16 = vsyncpa [#allocation4], 0  ;;  %s843_s24 = smov [#allocation5]   ;;  %s657_s28 = scalar_lea.hbm %s997_s1, 4096 }
   0x5   :  { %s32_s25 = sshll.u32 %s843_s24, 4  ;;  %p658_p0 = scmp.ne.s32.totalorder %s997_s1, %s657_s28  ;;  %s33_s25 = int_to_ptr.vmem [resolvable:$true] %s32_s25 }
   0x6   :  { %p661_p1 = scmp.lt.u32.totalorder %s657_s28, %s997_s1 }
   0x8   :  { %p663_p2 = pnand %p661_p1, %p658_p0 }
   0xa   :  { %666 = shalt.err (!%p663_p2)
}
   0xb   :  { %s667_s10 = scalar_lea.vmem %s33_s25, 4096  ;;  %p672_p4 = scmp.lt.s32.totalorder %s33_s25, %s33_s25 }
   0xc   :  { %p668_p3 = scmp.ne.s32.totalorder %s33_s25, %s667_s10  ;;  %p673_p5 = scmp.lt.s32.totalorder %s667_s10, %s667_s10 }
   0xe   :  { %p674_p6 = por %p673_p5, %p672_p4 }
  0x10   :  { %p675_p7 = pnand %p674_p6, %p668_p3 }
  0x12   :  { %678 = shalt.err (!%p675_p7)
}
  0x13   :  { %s844_s11 = smov 256   ;;  %s845_s12 = smov 16  }
  0x14   :  { %38 = dma.hbm_to_vmem [thread:$0]  %s997_s1, 4096, %s33_s25, [#allocation6], %s844_s11, %s844_s11, %s845_s12  }
  0x15   :  { %s846_s15 = smov [#allocation8]   ;;  %s679_s19 = scalar_lea.hbm %s999_s3, 4096 }
  0x16   :  { %s54_s16 = sshll.u32 %s846_s15, 4  ;;  %p680_p8 = scmp.ne.s32.totalorder %s999_s3, %s679_s19  ;;  %s55_s16 = int_to_ptr.vmem [resolvable:$true] %s54_s16 }
  0x17   :  { %p683_p9 = scmp.lt.u32.totalorder %s679_s19, %s999_s3 }
  0x19   :  { %p685_p10 = pnand %p683_p9, %p680_p8 }
  0x1b   :  { %688 = shalt.err (!%p685_p10)
}
  0x1c   :  { %s689_s24 = scalar_lea.vmem %s55_s16, 4096  ;;  %p694_p12 = scmp.lt.s32.totalorder %s55_s16, %s55_s16 }
  0x1d   :  { %p690_p11 = scmp.ne.s32.totalorder %s55_s16, %s689_s24  ;;  %p695_p13 = scmp.lt.s32.totalorder %s689_s24, %s689_s24 }
  0x1f   :  { %p696_p0 = por %p695_p13, %p694_p12 }
  0x21   :  { %p697_p1 = pnand %p696_p0, %p690_p11 }
  0x23   :  { %700 = shalt.err (!%p697_p1)
}
  0x24   :  { %s847_s1 = smov 128   ;;  %s848_s25 = smov 8  }
  0x25   :  { %60 = dma.hbm_to_vmem [thread:$0]  %s999_s3, 4096, %s55_s16, [#allocation9], %s847_s1, %s847_s1, %s848_s25  }
  0x26   :  { %s849_s28 = smov [#allocation11]   ;;  %s850_s30 = smov [#allocation2]  }
  0x27   :  { %s76_s29 = sshll.u32 %s849_s28, 4  ;;  %s23_s8 = sshll.u32 %s850_s30, 4  ;;  %s77_s29 = int_to_ptr.vmem [resolvable:$true] %s76_s29  ;;  %s24_s8 = int_to_ptr.vmem [resolvable:$true] %s23_s8 }
  0x28   :  { %s701_s11 = scalar_lea.hbm %s1001_s5, 2048 }
  0x29   :  { %p702_p2 = scmp.ne.s32.totalorder %s1001_s5, %s701_s11  ;;  %p705_p3 = scmp.lt.u32.totalorder %s701_s11, %s1001_s5 }
  0x2b   :  { %p707_p4 = pnand %p705_p3, %p702_p2 }
  0x2d   :  { %710 = shalt.err (!%p707_p4)
}
  0x2e   :  { %s711_s3 = scalar_lea.vmem %s77_s29, 2048  ;;  %p716_p6 = scmp.lt.s32.totalorder %s77_s29, %s77_s29 }
  0x2f   :  { %p712_p5 = scmp.ne.s32.totalorder %s77_s29, %s711_s3  ;;  %p717_p7 = scmp.lt.s32.totalorder %s711_s3, %s711_s3 }
  0x31   :  { %p718_p8 = por %p717_p7, %p716_p6 }
  0x33   :  { %p719_p9 = pnand %p718_p8, %p712_p5 }
  0x35   :  { %722 = shalt.err (!%p719_p9)
}
  0x36   :  { %82 = dma.hbm_to_vmem [thread:$0]  %s1001_s5, 2048, %s77_s29, [#allocation12], %s847_s1, %s847_s1, %s848_s25  }
  0x37   :  { %s723_s20 = scalar_lea.hbm %s996_s0, 32 }
  0x38   :  { %p724_p10 = scmp.ne.s32.totalorder %s996_s0, %s723_s20  ;;  %p727_p11 = scmp.lt.u32.totalorder %s723_s20, %s996_s0 }
  0x3a   :  { %p729_p12 = pnand %p727_p11, %p724_p10 }
  0x3c   :  { %732 = shalt.err (!%p729_p12)
}
  0x3d   :  { %s733_s26 = scalar_lea.vmem %s24_s8, 32  ;;  %p738_p0 = scmp.lt.s32.totalorder %s24_s8, %s24_s8 }
  0x3e   :  { %p734_p13 = scmp.ne.s32.totalorder %s24_s8, %s733_s26  ;;  %p739_p1 = scmp.lt.s32.totalorder %s733_s26, %s733_s26 }
  0x40   :  { %p740_p2 = por %p739_p1, %p738_p0 }
  0x42   :  { %p741_p3 = pnand %p740_p2, %p734_p13 }
  0x44   :  { %744 = shalt.err (!%p741_p3)
}
  0x45   :  { %26 = dma.hbm_to_vmem [thread:$0]  %s996_s0, 32, %s24_s8, [#allocation3]  }
  0x46   :  { %s851_s25 = smov [#allocation7]   ;;  %s852_s28 = smov [#allocation10]  }
  0x47   :  { %s45_s27 = sshll.u32 %s851_s25, 4  ;;  %s67_s29 = sshll.u32 %s852_s28, 4  ;;  %s46_s27 = int_to_ptr.vmem [resolvable:$true] %s45_s27  ;;  %s68_s29 = int_to_ptr.vmem [resolvable:$true] %s67_s29 }
  0x48   :  { %s745_s10 = scalar_lea.hbm %s998_s2, 32 }
  0x49   :  { %p746_p4 = scmp.ne.s32.totalorder %s998_s2, %s745_s10  ;;  %p749_p5 = scmp.lt.u32.totalorder %s745_s10, %s998_s2 }
  0x4b   :  { %p751_p6 = pnand %p749_p5, %p746_p4 }
  0x4d   :  { %754 = shalt.err (!%p751_p6)
}
  0x4e   :  { %s755_s0 = scalar_lea.vmem %s46_s27, 32  ;;  %p760_p8 = scmp.lt.s32.totalorder %s46_s27, %s46_s27 }
  0x4f   :  { %p756_p7 = scmp.ne.s32.totalorder %s46_s27, %s755_s0  ;;  %p761_p9 = scmp.lt.s32.totalorder %s755_s0, %s755_s0 }
  0x51   :  { %p762_p10 = por %p761_p9, %p760_p8 }
  0x53   :  { %p763_p11 = pnand %p762_p10, %p756_p7 }
  0x55   :  { %766 = shalt.err (!%p763_p11)
}
  0x56   :  { %48 = dma.hbm_to_vmem [thread:$0]  %s998_s2, 32, %s46_s27, [#allocation6]  }
  0x57   :  { %s767_s17 = scalar_lea.hbm %s1000_s4, 16 }
  0x58   :  { %p768_p12 = scmp.ne.s32.totalorder %s1000_s4, %s767_s17  ;;  %p771_p13 = scmp.lt.u32.totalorder %s767_s17, %s1000_s4 }
  0x5a   :  { %p773_p0 = pnand %p771_p13, %p768_p12 }
  0x5c   :  { %776 = shalt.err (!%p773_p0)
}
  0x5d   :  { %s777_s22 = scalar_lea.vmem %s68_s29, 16  ;;  %s781_s23 = scalar_lea.vmem %s68_s29, 32 }
  0x5e   :  { %p778_p1 = scmp.ne.s32.totalorder %s68_s29, %s777_s22  ;;  %p782_p2 = scmp.lt.s32.totalorder %s68_s29, %s68_s29 }
  0x5f   :  { %p783_p3 = scmp.lt.s32.totalorder %s781_s23, %s777_s22 }
  0x61   :  { %p784_p4 = por %p783_p3, %p782_p2 }
  0x63   :  { %p785_p5 = pnand %p784_p4, %p778_p1 }
  0x65   :  { %788 = shalt.err (!%p785_p5)
}
  0x66   :  { %70 = dma.hbm_to_vmem [thread:$0]  %s1000_s4, 16, %s68_s29, [#allocation9]  }
  0x67   :  { %s853_s26 = smov [#allocation13]   ;;  %s789_s27 = scalar_lea.hbm %s1002_s6, 16 }
  0x68   :  { %s89_s5 = sshll.u32 %s853_s26, 4  ;;  %p790_p6 = scmp.ne.s32.totalorder %s1002_s6, %s789_s27  ;;  %s90_s5 = int_to_ptr.vmem [resolvable:$true] %s89_s5 }
  0x69   :  { %p793_p7 = scmp.lt.u32.totalorder %s789_s27, %s1002_s6 }
  0x6b   :  { %p795_p8 = pnand %p793_p7, %p790_p6 }
  0x6d   :  { %798 = shalt.err (!%p795_p8)
}
  0x6e   :  { %s799_s11 = scalar_lea.vmem %s90_s5, 16  ;;  %s803_s4 = scalar_lea.vmem %s90_s5, 32 }
  0x6f   :  { %p800_p9 = scmp.ne.s32.totalorder %s90_s5, %s799_s11  ;;  %p804_p10 = scmp.lt.s32.totalorder %s90_s5, %s90_s5 }
  0x70   :  { %p805_p11 = scmp.lt.s32.totalorder %s803_s4, %s799_s11 }
  0x72   :  { %p806_p12 = por %p805_p11, %p804_p10 }
  0x74   :  { %p807_p13 = pnand %p806_p12, %p800_p9 }
  0x76   :  { %810 = shalt.err (!%p807_p13)
}
  0x77   :  { %92 = dma.hbm_to_vmem [thread:$0]  %s1002_s6, 16, %s90_s5, [#allocation12]  }
  0x78   :  { %833 = dma.done.wait [#allocation3], 32  }
  0x79   :  { %834 = vsyncadd [#allocation3], 4294967264 }
  0x7a   :  { %835 = dma.done.wait [#allocation6], 4128  }
  0x7b   :  { %836 = vsyncadd [#allocation6], 4294963168 }
  0x7c   :  { %837 = dma.done.wait [#allocation9], 4112  }
  0x7d   :  { %838 = vsyncadd [#allocation9], 4294963184 }
  0x7e   :  { %839 = dma.done.wait [#allocation12], 2064  }
  0x7f   :  { %840 = vsyncadd [#allocation12], 4294965232  ;;  %v854_v0 = vmov 0.0   ;;  %v116_v1 = vld [vmem:[#allocation5 + $0x8] sm:$0xff]  ;;  %v118_v2 = vld [vmem:[#allocation5 + $0x18] sm:$0xff]  ;;  %vm856_vm0 = vmmov 0  }
  0x80   :  { %223 = vmatprep.mubr.f32.mxu0 %v854_v0  ;;  %v115_v3 = vld [vmem:[#allocation5] sm:$0xff]  ;;  %v550_v4 = vpack.c.bf16 %v118_v2, %v116_v1  ;;  %v117_v5 = vld [vmem:[#allocation5 + $0x10] sm:$0xff]  ;;  %v120_v6 = vld [vmem:[#allocation5 + $0x28] sm:$0xff]  ;;  %s857_s6 = smov [#allocation14]  }
  0x81   :  { %v122_v7 = vld [vmem:[#allocation5 + $0x38] sm:$0xff]  ;;  %v552_v8 = vpack.c.bf16 %v117_v5, %v115_v3  ;;  %v119_v10 = vld [vmem:[#allocation5 + $0x20] sm:$0xff]  ;;  %v121_v11 = vld [vmem:[#allocation5 + $0x30] sm:$0xff]  ;;  %s448_s13 = sshll.u32 %s857_s6, 4  ;;  %s449_s13 = int_to_ptr.vmem [resolvable:$true] %s448_s13 }
  0x82   :  { %v554_v9 = vpack.c.bf16 %v122_v7, %v120_v6  ;;  %v124_v12 = vld [vmem:[#allocation5 + $0x48] sm:$0xff]  ;;  %551 = vmatprep.subr.bf16.mxu0 %v550_v4  ;;  %v126_v13 = vld [vmem:[#allocation5 + $0x58] sm:$0xff]  ;;  %v556_v14 = vpack.c.bf16 %v121_v11, %v119_v10  ;;  %v123_v16 = vld [vmem:[#allocation5 + $0x40] sm:$0xff]  ;;  %s811_s14 = scalar_lea.vmem %s449_s13, 32  ;;  %p816_p1 = scmp.lt.s32.totalorder %s449_s13, %s449_s13 }
  0x83   :  { %553 = vmatpush1.bf16.msra.mxu0 %v552_v8  ;;  %v558_v15 = vpack.c.bf16 %v126_v13, %v124_v12  ;;  %v125_v17 = vld [vmem:[#allocation5 + $0x50] sm:$0xff]  ;;  %v128_v18 = vld [vmem:[#allocation5 + $0x68] sm:$0xff]  ;;  %v130_v19 = vld [vmem:[#allocation5 + $0x78] sm:$0xff]  ;;  %p812_p0 = scmp.ne.s32.totalorder %s449_s13, %s811_s14  ;;  %p817_p2 = scmp.lt.s32.totalorder %s811_s14, %s811_s14 }
  0x84   :  { %555 = vmatprep.subr.bf16.mxu0 %v554_v9  ;;  %v560_v20 = vpack.c.bf16 %v125_v17, %v123_v16  ;;  %v562_v21 = vpack.c.bf16 %v130_v19, %v128_v18  ;;  %v127_v22 = vld [vmem:[#allocation5 + $0x60] sm:$0xff]  ;;  %v129_v23 = vld [vmem:[#allocation5 + $0x70] sm:$0xff]  ;;  %v132_v24 = vld [vmem:[#allocation5 + $0x88] sm:$0xff] }
  0x85   :  { %v134_v25 = vld [vmem:[#allocation5 + $0x98] sm:$0xff]  ;;  %v131_v26 = vld [vmem:[#allocation5 + $0x80] sm:$0xff]  ;;  %v133_v27 = vld [vmem:[#allocation5 + $0x90] sm:$0xff]  ;;  %v564_v31 = vpack.c.bf16 %v129_v23, %v127_v22  ;;  %p818_p3 = por %p817_p2, %p816_p1 }
  0x86   :  { %v248_v28 = vld [vmem:[#allocation8 + $0x80] sm:$0xff]  ;;  %v249_v29 = vld [vmem:[#allocation8 + $0x88] sm:$0xff]  ;;  %v250_v34 = vld [vmem:[#allocation8 + $0x90] sm:$0xff]  ;;  %v566_v36 = vpack.c.bf16 %v134_v25, %v132_v24  ;;  %v568_v46 = vpack.c.bf16 %v133_v27, %v131_v26 }
  0x87   :  { %557 = vmatpush1.bf16.msra.mxu0 %v556_v14  ;;  %v232_v30 = vld [vmem:[#allocation8] sm:$0xff]  ;;  %v582_v32 = vpack.c.bf16 %v249_v29, %v248_v28  ;;  %v233_v33 = vld [vmem:[#allocation8 + $0x8] sm:$0xff]  ;;  %v251_v35 = vld [vmem:[#allocation8 + $0x98] sm:$0xff]  ;;  %p819_p4 = pnand %p818_p3, %p812_p0 }
  0x88   :  { %559 = vmatprep.subr.bf16.mxu0 %v558_v15  ;;  %v584_v37 = vpack.c.bf16 %v233_v33, %v232_v30  ;;  %v586_v38 = vpack.c.bf16 %v251_v35, %v250_v34  ;;  %v234_v39 = vld [vmem:[#allocation8 + $0x10] sm:$0xff]  ;;  %v235_v40 = vld [vmem:[#allocation8 + $0x18] sm:$0xff]  ;;  %v252_v41 = vld [vmem:[#allocation8 + $0xa0] sm:$0xff] }
  0x89   :  { %v136_v42 = vld [vmem:[#allocation5 + $0xa8] sm:$0xff]  ;;  %v138_v43 = vld [vmem:[#allocation5 + $0xb8] sm:$0xff]  ;;  %583 = vmatprep.subr.bf16.mxu1 %v582_v32  ;;  %v588_v45 = vpack.c.bf16 %v235_v40, %v234_v39  ;;  %v135_v47 = vld [vmem:[#allocation5 + $0xa0] sm:$0xff] }
  0x8a   :  { %v253_v44 = vld [vmem:[#allocation8 + $0xa8] sm:$0xff]  ;;  %585 = vmatpush3.bf16.msra.mxu1 %v584_v37  ;;  %v236_v49 = vld [vmem:[#allocation8 + $0x20] sm:$0xff]  ;;  %v570_v51 = vpack.c.bf16 %v138_v43, %v136_v42  ;;  %v254_v53 = vld [vmem:[#allocation8 + $0xb0] sm:$0xff] }
  0x8b   :  { %561 = vmatpush1.bf16.msra.mxu0 %v560_v20  ;;  %587 = vmatprep.subr.bf16.mxu1 %v586_v38  ;;  %v590_v48 = vpack.c.bf16 %v253_v44, %v252_v41  ;;  %v237_v50 = vld [vmem:[#allocation8 + $0x28] sm:$0xff]  ;;  %v255_v54 = vld [vmem:[#allocation8 + $0xb8] sm:$0xff]  ;;  %v238_v61 = vld [vmem:[#allocation8 + $0x30] sm:$0xff]  ;;  %v855_v38 = vmov 0.0|0.0  }
  0x8c   :  { %563 = vmatprep.subr.bf16.mxu0 %v562_v21  ;;  %v137_v52 = vld [vmem:[#allocation5 + $0xb0] sm:$0xff]  ;;  %v140_v55 = vld [vmem:[#allocation5 + $0xc8] sm:$0xff]  ;;  %v142_v56 = vld [vmem:[#allocation5 + $0xd8] sm:$0xff]  ;;  %v592_v57 = vpack.c.bf16 %v237_v50, %v236_v49  ;;  %v594_v60 = vpack.c.bf16 %v255_v54, %v254_v53  ;;  %v149_v54 = vlaneseq }
  0x8d   :  { %v572_v58 = vpack.c.bf16 %v137_v52, %v135_v47  ;;  %v139_v59 = vld [vmem:[#allocation5 + $0xc0] sm:$0xff]  ;;  %v574_v63 = vpack.c.bf16 %v142_v56, %v140_v55  ;;  %v141_v1 = vld [vmem:[#allocation5 + $0xd0] sm:$0xff]  ;;  %v144_v4 = vld [vmem:[#allocation5 + $0xe8] sm:$0xff] }
  0x8e   :  { %589 = vmatpush3.bf16.msra.mxu1 %v588_v45  ;;  %v239_v62 = vld [vmem:[#allocation8 + $0x38] sm:$0xff]  ;;  %v256_v2 = vld [vmem:[#allocation8 + $0xc0] sm:$0xff]  ;;  %v257_v3 = vld [vmem:[#allocation8 + $0xc8] sm:$0xff]  ;;  %v576_v7 = vpack.c.bf16 %v141_v1, %v139_v59  ;;  %v150_v55 = vshrl.u32 %v149_v54, 7 }
  0x8f   :  { %565 = vmatpush1.bf16.msra.mxu0 %v564_v31  ;;  %591 = vmatprep.subr.bf16.mxu1 %v590_v48  ;;  %v146_v5 = vld [vmem:[#allocation5 + $0xf8] sm:$0xff]  ;;  %v596_v6 = vpack.c.bf16 %v239_v62, %v238_v61  ;;  %v143_v8 = vld [vmem:[#allocation5 + $0xe0] sm:$0xff]  ;;  %v598_v9 = vpack.c.bf16 %v257_v3, %v256_v2  ;;  %v241_v11 = vld [vmem:[#allocation8 + $0x48] sm:$0xff] }
  0x90   :  { %567 = vmatprep.subr.bf16.mxu0 %v566_v36  ;;  %v240_v10 = vld [vmem:[#allocation8 + $0x40] sm:$0xff]  ;;  %v578_v12 = vpack.c.bf16 %v146_v5, %v144_v4  ;;  %v145_v13 = vld [vmem:[#allocation5 + $0xf0] sm:$0xff]  ;;  %v259_v15 = vld [vmem:[#allocation8 + $0xd8] sm:$0xff]  ;;  %v151_v56 = vsub.s32 0, %v150_v55 }
  0x91   :  { %v258_v14 = vld [vmem:[#allocation8 + $0xd0] sm:$0xff]  ;;  %v600_v16 = vpack.c.bf16 %v241_v11, %v240_v10  ;;  %v580_v17 = vpack.c.bf16 %v145_v13, %v143_v8  ;;  %v243_v20 = vld [vmem:[#allocation8 + $0x58] sm:$0xff]  ;;  %v260_v21 = vld [vmem:[#allocation8 + $0xe0] sm:$0xff] }
  0x92   :  { %593 = vmatpush3.bf16.msra.mxu1 %v592_v57  ;;  %v602_v18 = vpack.c.bf16 %v259_v15, %v258_v14  ;;  %v242_v19 = vld [vmem:[#allocation8 + $0x50] sm:$0xff]  ;;  %v261_v22 = vld [vmem:[#allocation8 + $0xe8] sm:$0xff]  ;;  %v114_v24 = vld [vmem:[#allocation2] sm:$0x3] }
  0x93   :  { %569 = vmatpush1.bf16.msra.mxu0 %v568_v46  ;;  %595 = vmatprep.subr.bf16.mxu1 %v594_v60  ;;  %v604_v23 = vpack.c.bf16 %v243_v20, %v242_v19  ;;  %v606_v25 = vpack.c.bf16 %v261_v22, %v260_v21  ;;  %v244_v26 = vld [vmem:[#allocation8 + $0x60] sm:$0xff]  ;;  %v245_v27 = vld [vmem:[#allocation8 + $0x68] sm:$0xff]  ;;  %v262_v29 = vld [vmem:[#allocation8 + $0xf0] sm:$0xff] }
  0x94   :  { %571 = vmatprep.subr.bf16.mxu0 %v570_v51  ;;  %v608_v28 = vpack.c.bf16 %v245_v27, %v244_v26  ;;  %v263_v30 = vld [vmem:[#allocation8 + $0xf8] sm:$0xff]  ;;  %v246_v32 = vld [vmem:[#allocation8 + $0x70] sm:$0xff]  ;;  %v342_v35 = vld [vmem:[#allocation11] sm:$0xff] }
  0x95   :  { %v610_v31 = vpack.c.bf16 %v263_v30, %v262_v29  ;;  %v247_v33 = vld [vmem:[#allocation8 + $0x78] sm:$0xff]  ;;  %v343_v36 = vld [vmem:[#allocation11 + $0x8] sm:$0xff]  ;;  %v346_v42 = vld [vmem:[#allocation11 + $0x20] sm:$0xff] }
  0x96   :  { %597 = vmatpush3.bf16.msra.mxu1 %v596_v6  ;;  %v612_v34 = vpack.c.bf16 %v247_v33, %v246_v32  ;;  %v344_v37 = vld [vmem:[#allocation11 + $0x10] sm:$0xff]  ;;  %v615_v39 = vpack.c.bf16 %v343_v36, %v342_v35  ;;  %v345_v40 = vld [vmem:[#allocation11 + $0x18] sm:$0xff]  ;;  %v347_v43 = vld [vmem:[#allocation11 + $0x28] sm:$0xff] }
  0x97   :  { %573 = vmatpush1.bf16.msra.mxu0 %v572_v58  ;;  %599 = vmatprep.subr.bf16.mxu1 %v598_v9  ;;  %v618_v41 = vpack.c.bf16 %v345_v40, %v344_v37  ;;  %v621_v44 = vpack.c.bf16 %v347_v43, %v346_v42  ;;  %v348_v45 = vld [vmem:[#allocation11 + $0x30] sm:$0xff]  ;;  %v349_v46 = vld [vmem:[#allocation11 + $0x38] sm:$0xff]  ;;  %v350_v48 = vld [vmem:[#allocation11 + $0x40] sm:$0xff]  ;;  %v155_v58 = vsub.s32 1, %v150_v55 }
  0x98   :  { %575 = vmatprep.subr.bf16.mxu0 %v574_v63  ;;  %v624_v47 = vpack.c.bf16 %v349_v46, %v348_v45  ;;  %v351_v49 = vld [vmem:[#allocation11 + $0x48] sm:$0xff]  ;;  %v352_v51 = vld [vmem:[#allocation11 + $0x50] sm:$0xff]  ;;  %v353_v52 = vld [vmem:[#allocation11 + $0x58] sm:$0xff] }
  0x99   :  { %v627_v50 = vpack.c.bf16 %v351_v49, %v350_v48  ;;  %v630_v53 = vpack.c.bf16 %v353_v52, %v352_v51  ;;  %v147_v57 = vld [vmem:[#allocation7] sm:$0x3]  ;;  %v354_v4 = vld [vmem:[#allocation11 + $0x60] sm:$0xff]  ;;  %v355_v5 = vld [vmem:[#allocation11 + $0x68] sm:$0xff] }
  0x9a   :  { %601 = vmatpush3.bf16.msra.mxu1 %v600_v16  ;;  %v152_v59 = vrot.slane %v147_v57, %v151_v56  ;;  %v156_v60 = vrot.slane %v147_v57, %v155_v58  ;;  %v633_v6 = vpack.c.bf16 %v355_v5, %v354_v4  ;;  %v357_v8 = vld [vmem:[#allocation11 + $0x78] sm:$0xff]  ;;  %v461_v16 = vld [vmem:[#allocation13] ss:$0 sm:$0xff] }
  0x9b   :  { %577 = vmatpush1.bf16.msra.mxu0 %v576_v7  ;;  %603 = vmatprep.subr.bf16.mxu1 %v602_v18  ;;  %v356_v7 = vld [vmem:[#allocation11 + $0x70] sm:$0xff]  ;;  %v460_v11 = vld [vmem:[#allocation10] ss:$0 sm:$0xff] }
  0x9c   :  { %579 = vmatprep.subr.bf16.mxu0 %v578_v12  ;;  %v636_v9 = vpack.c.bf16 %v357_v8, %v356_v7 }
  0x9e   :  { %605 = vmatpush3.bf16.msra.mxu1 %v604_v23 }
  0x9f   :  { %581 = vmatpush1.bf16.msra.mxu0 %v580_v17  ;;  %607 = vmatprep.subr.bf16.mxu1 %v606_v25 }
  0xa0   :  { %614 = vmatprep.subr.bf16.mxu0 %v855_v38 }
  0xa2   :  { %224 = vmatmul.mubr.f32.vlgmr.msra.gmra.mrb[0].mxu0 %v114_v24  ;;  %609 = vmatpush3.bf16.msra.mxu1 %v608_v28 }
  0xa3   :  { %611 = vmatprep.subr.bf16.mxu1 %v610_v31  ;;  %616 = vmatpush3.bf16.msra.mxu0 %v615_v39 }
  0xa4   :  { %617 = vmatprep.subr.bf16.mxu0 %v855_v38  ;;  %547 = vmatprep.mubr.msk.f32.mxu0 %vm856_vm0, %v854_v0 }
  0xa6   :  { %613 = vmatpush3.bf16.msra.mxu1 %v612_v34 }
  0xa7   :  { %619 = vmatpush3.bf16.msra.mxu0 %v618_v41 }
  0xa8   :  { %620 = vmatprep.subr.bf16.mxu0 %v855_v38 }
  0xab   :  { %622 = vmatpush3.bf16.msra.mxu0 %v621_v44 }
  0xac   :  { %623 = vmatprep.subr.bf16.mxu0 %v855_v38 }
  0xaf   :  { %625 = vmatpush3.bf16.msra.mxu0 %v624_v47 }
  0xb0   :  { %626 = vmatprep.subr.bf16.mxu0 %v855_v38 }
  0xb3   :  { %628 = vmatpush3.bf16.msra.mxu0 %v627_v50 }
  0xb4   :  { %629 = vmatprep.subr.bf16.mxu0 %v855_v38 }
  0xb7   :  { %631 = vmatpush3.bf16.msra.mxu0 %v630_v53 }
  0xb8   :  { %632 = vmatprep.subr.bf16.mxu0 %v855_v38 }
  0xbb   :  { %634 = vmatpush3.bf16.msra.mxu0 %v633_v6 }
  0xbc   :  { %635 = vmatprep.subr.bf16.mxu0 %v855_v38 }
  0xbf   :  { %637 = vmatpush3.bf16.msra.mxu0 %v636_v9 }
 0x175   :  { %v225_v61 = vpop.f32.mrb[0].mxu0 }
 0x176   :  { %v226_v62 = vadd.f32 %v225_v61, %v152_v59  ;;  %v227_v63 = vpop.f32.mrb[1].mxu0 }
 0x177   :  { %v228_v1 = vadd.f32 %v227_v63, %v156_v60 }
 0x178   :  { %v230_v3 = vmax.f32 %v226_v62, 0.0 }
 0x179   :  { %v231_v2 = vmax.f32 %v228_v1, 0.0 }
 0x17b   :  { %335 = vmatprep.mubr.f32.mxu1 %v231_v2 }
 0x17c   :  { %336 = vmatmul.mubr.f32.vlgmr.msra.gmra.mrb[0].mxu1 %v230_v3 }
 0x24f   :  { %v495_v10 = vpop.f32.mrb[0].mxu1 }
 0x250   :  { %v496_v12 = vpop.f32.mrb[1].mxu1 }
 0x251   :  { %v497_v13 = vadd.f32 %v496_v12, %v495_v10 }
 0x253   :  { %v338_v14 = vadd.f32 %v497_v13, %v460_v11 }
 0x255   :  { %v341_v15 = vmax.f32 %v338_v14, 0.0 }
 0x257   :  { %548 = vmatmul.mubr.f32.vlgmr.msra.gmra.mrb[2].mxu0 %v341_v15 }
 0x32a   :  { %v431_v17 = vpop.f32.mrb[2].mxu0 }
 0x32b   :  { %v432_v18 = vadd.f32 %v461_v16, %v431_v17  ;;  %v549_v19 = vpop.f32.mrb[3].mxu0 }
 0x32d   :  { %v462_v20 = vmul.f32 -1.442695, %v432_v18 }
 0x32f   :  { %653 = vpow2.f32 %v462_v20 }
 0x339   :  { %v654_v21 = vpop.eup %653 }
 0x33a   :  { %v438_v22 = vadd.f32 1.0, %v654_v21 }
 0x33c   :  { %655 = vrcp.f32 %v438_v22 }
 0x346   :  { %v656_v0 = vpop.eup %655 }
 0x347   :  { %441 = vst [vmem:[#allocation14] sm:$0x3] %v656_v0 }
 0x348   :  { %822 = shalt.err (!%p819_p4)
}
 0x349   :  { %s823_s15 = scalar_lea.hbm %s1003_s7, 32 }
 0x34a   :  { %p824_p5 = scmp.ne.s32.totalorder %s1003_s7, %s823_s15  ;;  %p827_p6 = scmp.lt.u32.totalorder %s823_s15, %s1003_s7 }
 0x34c   :  { %p829_p7 = pnand %p827_p6, %p824_p5 }
 0x34e   :  { %832 = shalt.err (!%p829_p7)
}
 0x34f   :  { %451 = dma.vmem_to_hbm [thread:$0]  %s449_s13, 32, %s1003_s7, [#allocation4]  }
 0x350   :  { %841 = dma.done.wait [#allocation4], 32  }
 0x351   :  { %842 = vsyncadd [#allocation4], 4294967264 }
 0x352   :  { %455 = vsyncpa [#allocation3], 1 }
 0x353   :  { %456 = vsyncpa [#allocation6], 1 }
 0x354   :  { %457 = vsyncpa [#allocation9], 1 }
 0x355   :  { %458 = vsyncpa [#allocation12], 1 }
 0x356   :  { %459 = vsyncpa [#allocation4], 1 }

</bundles_post_ra>
